<compile_context>
chip_gen: v5e
topology: v5e:2x2
jax: 0.10.0
libtpu: 0.0.40
codegen_flags: <defaults>
</compile_context>

<pallas_src>
import jax
import jax.numpy as jnp
from jax.experimental import pallas as pl
from jax.experimental.pallas import tpu as pltpu

N_EMBD = 32
HIDDEN = 4 * N_EMBD  # 128


def _round_up(x, m):
    return ((x + m - 1) // m) * m


def ffn_kernel(x_ref, w1_ref, b1_ref, w2_ref, b2_ref, o_ref):
    # x_ref: (TM, C), w1_ref: (C, H), b1_ref: (1, H), w2_ref: (H, C), b2_ref: (1, C)
    x = x_ref[...]
    w1 = w1_ref[...]
    b1 = b1_ref[...]          # hoisted loads: broadcast materialized once
    w2 = w2_ref[...]
    b2 = b2_ref[...]
    h = jnp.dot(x, w1, preferred_element_type=jnp.float32) + b1
    h = jnp.maximum(h, 0.0)   # ReLU on the VPU
    y = jnp.dot(h.astype(w2.dtype), w2, preferred_element_type=jnp.float32) + b2
    o_ref[...] = y.astype(o_ref.dtype)


def feed_forward(x, w1, b1, w2, b2, *, block_rows=1024):
    """x: (..., n_embd). Returns relu(x @ W1 + b1) @ W2 + b2, same shape/dtype."""
    orig_shape = x.shape
    C = orig_shape[-1]
    H = w1.shape[1]
    x2d = x.reshape(-1, C)
    M = x2d.shape[0]

    # Row tile: large enough to amortize per-step overhead and keep the DMA
    # stream busy; multiple of 8 (f32 sublane). A (tm, 32) f32 block is only
    # tm*128 bytes, so VMEM is never the constraint at tm <= 2048.
    tm = min(block_rows, _round_up(M, 8))
    m_pad = _round_up(M, tm)
    if m_pad != M:
        x2d = jnp.pad(x2d, ((0, m_pad - M), (0, 0)))

    out2d = pl.pallas_call(
        ffn_kernel,
        out_shape=jax.ShapeDtypeStruct((m_pad, C), x.dtype),
        grid=(m_pad // tm,),
        in_specs=[
            pl.BlockSpec((tm, C), lambda i: (i, 0)),   # streamed activations
            pl.BlockSpec((C, H), lambda i: (0, 0)),    # grid-invariant weights/biases
            pl.BlockSpec((1, H), lambda i: (0, 0)),
            pl.BlockSpec((H, C), lambda i: (0, 0)),
            pl.BlockSpec((1, C), lambda i: (0, 0)),
        ],
        out_specs=pl.BlockSpec((tm, C), lambda i: (i, 0)),
        compiler_params=pltpu.CompilerParams(
            # Independent row tiles: shard across both TensorCores on v7x,
            # neutral on single-TC v5e/v6e.
            dimension_semantics=("parallel",)),
    )(x2d, w1, b1, w2, b2)

    if m_pad != M:
        out2d = out2d[:M]
    return out2d.reshape(orig_shape)


def init_params(key, n_embd=N_EMBD):
    """Deterministic init mirroring nn.Linear (uniform(-1/sqrt(fan_in), +))."""
    k1, k2, k3, k4 = jax.random.split(key, 4)
    hidden = 4 * n_embd
    bound1 = 1.0 / jnp.sqrt(jnp.float32(n_embd))
    bound2 = 1.0 / jnp.sqrt(jnp.float32(hidden))
    # stored as (in, out) for the kernel (PyTorch stores (out, in); pre-transposed)
    w1 = jax.random.uniform(k1, (n_embd, hidden), jnp.float32, -bound1, bound1)
    b1 = jax.random.uniform(k2, (1, hidden), jnp.float32, -bound1, bound1)
    w2 = jax.random.uniform(k3, (hidden, n_embd), jnp.float32, -bound2, bound2)
    b2 = jax.random.uniform(k4, (1, n_embd), jnp.float32, -bound2, bound2)
    return w1, b1, w2, b2


def _ref_ffn(x, w1, b1, w2, b2):
    h = jnp.maximum(x.reshape(-1, x.shape[-1]) @ w1 + b1, 0.0)
    return (h @ w2 + b2).reshape(x.shape)


if __name__ == "__main__":
    key = jax.random.PRNGKey(0)
    kx, kp, kx2 = jax.random.split(key, 3)

    w1, b1, w2, b2 = init_params(kp)

    # Small shape consistent with the module (batch=2, seq=8, n_embd=32).
    B, T = 2, 8
    x = jax.random.normal(kx, (B, T, N_EMBD), jnp.float32)
    out = jax.block_until_ready(feed_forward(x, w1, b1, w2, b2))
    ref = _ref_ffn(x, w1, b1, w2, b2)
    assert out.shape == (B, T, N_EMBD)
    assert jnp.allclose(out, ref, atol=1e-5, rtol=1e-5)

    # Also exercise the tiled + padded multi-block path (M = 2100, not a
    # multiple of the 1024-row tile -> 3 grid steps with a ragged tail).
    B2, T2 = 3, 700
    x2 = jax.random.normal(kx2, (B2, T2, N_EMBD), jnp.float32)
    out2 = jax.block_until_ready(feed_forward(x2, w1, b1, w2, b2))
    ref2 = _ref_ffn(x2, w1, b1, w2, b2)
    assert out2.shape == (B2, T2, N_EMBD)
    assert jnp.allclose(out2, ref2, atol=1e-5, rtol=1e-5)

    print("KERNEL_OK")
</pallas_src>

<mosaic_0001>
module attributes {stable_mosaic.version = 11 : i64} {
  func.func @ffn_kernel(%arg0: i32, %arg1: memref<16x32xf32, #tpu.memory_space<vmem>>, %arg2: memref<32x128xf32, #tpu.memory_space<vmem>>, %arg3: memref<1x128xf32, #tpu.memory_space<vmem>>, %arg4: memref<128x32xf32, #tpu.memory_space<vmem>>, %arg5: memref<1x32xf32, #tpu.memory_space<vmem>>, %arg6: memref<16x32xf32, #tpu.memory_space<vmem>>) attributes {dimension_semantics = [#tpu.dimension_semantics<parallel>], iteration_bounds = array<i64: 1>, scalar_prefetch = 0 : i64, scratch_operands = 0 : i64, tpu.core_type = #tpu.core_type<tc>, window_params = [{transform_indices = @transform_0, window_bounds = array<i64: 16, 32>}, {pipeline_mode = #tpu.pipeline_mode<synchronous>, transform_indices = @transform_1, window_bounds = array<i64: 32, 128>}, {pipeline_mode = #tpu.pipeline_mode<synchronous>, transform_indices = @transform_2, window_bounds = array<i64: 1, 128>}, {pipeline_mode = #tpu.pipeline_mode<synchronous>, transform_indices = @transform_3, window_bounds = array<i64: 128, 32>}, {pipeline_mode = #tpu.pipeline_mode<synchronous>, transform_indices = @transform_4, window_bounds = array<i64: 1, 32>}, {transform_indices = @transform_5, window_bounds = array<i64: 16, 32>}]} {
    %c0 = arith.constant 0 : index
    %c0_0 = arith.constant 0 : index
    %0 = vector.load %arg1[%c0, %c0_0] : memref<16x32xf32, #tpu.memory_space<vmem>>, vector<16x32xf32>
    %c0_1 = arith.constant 0 : index
    %c0_2 = arith.constant 0 : index
    %1 = vector.load %arg2[%c0_1, %c0_2] : memref<32x128xf32, #tpu.memory_space<vmem>>, vector<32x128xf32>
    %c0_3 = arith.constant 0 : index
    %c0_4 = arith.constant 0 : index
    %2 = vector.load %arg3[%c0_3, %c0_4] : memref<1x128xf32, #tpu.memory_space<vmem>>, vector<1x128xf32>
    %c0_5 = arith.constant 0 : index
    %c0_6 = arith.constant 0 : index
    %3 = vector.load %arg4[%c0_5, %c0_6] : memref<128x32xf32, #tpu.memory_space<vmem>>, vector<128x32xf32>
    %c0_7 = arith.constant 0 : index
    %c0_8 = arith.constant 0 : index
    %4 = vector.load %arg5[%c0_7, %c0_8] : memref<1x32xf32, #tpu.memory_space<vmem>>, vector<1x32xf32>
    %cst = arith.constant dense<0.000000e+00> : vector<16x128xf32>
    %5 = tpu.matmul %0, %1, %cst {dimension_numbers = #tpu.dot_dimension_numbers<[1], [0], [0], [1], [0, 0, 1, 1], [], []>} : vector<16x32xf32>, vector<32x128xf32>, vector<16x128xf32> -> vector<16x128xf32>
    %6 = vector.broadcast %2 : vector<1x128xf32> to vector<16x128xf32>
    %7 = arith.addf %5, %6 : vector<16x128xf32>
    %cst_9 = arith.constant 0.000000e+00 : f32
    %8 = vector.broadcast %cst_9 : f32 to vector<16x128xf32>
    %9 = arith.maximumf %7, %8 : vector<16x128xf32>
    %cst_10 = arith.constant dense<0.000000e+00> : vector<16x32xf32>
    %10 = tpu.matmul %9, %3, %cst_10 {dimension_numbers = #tpu.dot_dimension_numbers<[1], [0], [0], [1], [0, 0, 1, 1], [], []>} : vector<16x128xf32>, vector<128x32xf32>, vector<16x32xf32> -> vector<16x32xf32>
    %11 = vector.broadcast %4 : vector<1x32xf32> to vector<16x32xf32>
    %12 = arith.addf %10, %11 : vector<16x32xf32>
    %c0_11 = arith.constant 0 : index
    %c0_12 = arith.constant 0 : index
    %13 = vector.load %arg6[%c0_11, %c0_12] : memref<16x32xf32, #tpu.memory_space<vmem>>, vector<16x32xf32>
    tpu.vector_store %arg6[%c0_11, %c0_12], %12 {strides = array<i32>} : memref<16x32xf32, #tpu.memory_space<vmem>>, vector<16x32xf32>,
    return
  }
  func.func @transform_0(%arg0: i32) -> (i32, i32) {
    %c0_i32 = arith.constant 0 : i32
    %c0_i32_0 = arith.constant 0 : i32
    return %arg0, %c0_i32 : i32, i32
  }
  func.func @transform_1(%arg0: i32) -> (i32, i32) {
    %c0_i32 = arith.constant 0 : i32
    %c0_i32_0 = arith.constant 0 : i32
    %c0_i32_1 = arith.constant 0 : i32
    return %c0_i32, %c0_i32_0 : i32, i32
  }
  func.func @transform_2(%arg0: i32) -> (i32, i32) {
    %c0_i32 = arith.constant 0 : i32
    %c0_i32_0 = arith.constant 0 : i32
    %c0_i32_1 = arith.constant 0 : i32
    return %c0_i32, %c0_i32_0 : i32, i32
  }
  func.func @transform_3(%arg0: i32) -> (i32, i32) {
    %c0_i32 = arith.constant 0 : i32
    %c0_i32_0 = arith.constant 0 : i32
    %c0_i32_1 = arith.constant 0 : i32
    return %c0_i32, %c0_i32_0 : i32, i32
  }
  func.func @transform_4(%arg0: i32) -> (i32, i32) {
    %c0_i32 = arith.constant 0 : i32
    %c0_i32_0 = arith.constant 0 : i32
    %c0_i32_1 = arith.constant 0 : i32
    return %c0_i32, %c0_i32_0 : i32, i32
  }
  func.func @transform_5(%arg0: i32) -> (i32, i32) {
    %c0_i32 = arith.constant 0 : i32
    %c0_i32_0 = arith.constant 0 : i32
    return %arg0, %c0_i32 : i32, i32
  }
}

</mosaic_0001>

<bundles_post_ra>
// kernel: tpu_custom_call.1
= control target key start
LH: loop header
LB: loop body
LE: loop exit
PB: predicated region body
PF: predicated region fallthrough
CT: control target
= control target key end

     0   :  { %vm48_vm0 = vcmask 261120   ;;  %s287_s0 = inlined_call_operand.vmem [shape: f32[16,32], index: 0, kind: input, shape index: {}]   ;;  %s288_s1 = inlined_call_operand.vmem [shape: f32[32,128], index: 1, kind: input, shape index: {}]   ;;  %s289_s2 = inlined_call_operand.vmem [shape: f32[1,128], index: 2, kind: input, shape index: {}]   ;;  %s290_s3 = inlined_call_operand.vmem [shape: f32[128,32], index: 3, kind: input, shape index: {}]   ;;  %s291_s4 = inlined_call_operand.vmem [shape: f32[1,32], index: 4, kind: input, shape index: {}]   ;;  %s292_s5 = inlined_call_operand.hbm [shape: f32[16,32], index: 5, kind: output, shape index: {}]  }
   0x1   :  { %v26_v0 = vld [vmem:[%s288_s1 + $0x18] sm:$0xff]  ;;  %v25_v1 = vld [vmem:[%s288_s1 + $0x10] sm:$0xff]  ;;  %v24_v2 = vld [vmem:[%s288_s1 + $0x8] sm:$0xff] }
   0x2   :  { %67 = vmatpush.msra.mxu0 %v26_v0  ;;  %v43_v3 = vld [vmem:[%s290_s3 + $0x78] sm:$0xff]  ;;  %v42_v4 = vld [vmem:[%s290_s3 + $0x70] sm:$0xff]  ;;  %v23_v5 = vld [vmem:[%s288_s1] sm:$0xff] }
   0x3   :  { %83 = vmatpush.msra.mxu1 %v43_v3  ;;  %v41_v6 = vld [vmem:[%s290_s3 + $0x68] sm:$0xff]  ;;  %128 = vmatpush.msra.mxu2 %v43_v3  ;;  %v21_v7 = vld [vmem:[%s287_s0] sm:$0xff] }
   0x4   :  { %68 = vmatpush.msra.mxu0 %v25_v1  ;;  %v40_v8 = vld [vmem:[%s290_s3 + $0x60] sm:$0xff] }
   0x5   :  { %84 = vmatpush.msra.mxu1 %v42_v4  ;;  %129 = vmatpush.msra.mxu2 %v42_v4 }
   0x6   :  { %69 = vmatpush.msra.mxu0 %v24_v2 }
   0x7   :  { %85 = vmatpush.msra.mxu1 %v41_v6 }
   0x8   :  { %70 = vmatpush.msra.mxu0 %v23_v5 }
   0x9   :  { %10 = vsyncpa [#allocation3], 0  ;;  %126 = vmatmul.msk.f32.vlgmr.msra.gmra.mxu0 %vm48_vm0, %v21_v7  ;;  %v39_v9 = vld [vmem:[%s290_s3 + $0x58] sm:$0xff]  ;;  %130 = vmatpush.msra.mxu2 %v41_v6  ;;  %v38_v10 = vld [vmem:[%s290_s3 + $0x50] sm:$0xff]  ;;  %s114_s15 = sshll.u32 %s292_s5, 4  ;;  %s176_s16 = smov 128   ;;  %s115_s15 = int_to_ptr.hbm [resolvable:$true] %s114_s15 }
   0xa   :  { %86 = vmatpush.msra.mxu1 %v40_v8  ;;  %v37_v11 = vld [vmem:[%s290_s3 + $0x48] sm:$0xff]  ;;  %v36_v13 = vld [vmem:[%s290_s3 + $0x40] sm:$0xff]  ;;  %v35_v14 = vld [vmem:[%s290_s3 + $0x38] sm:$0xff]  ;;  %s177_s17 = smov 8  }
   0xb   :  { %131 = vmatpush.msra.mxu2 %v40_v8  ;;  %v22_v12 = vld [vmem:[%s287_s0 + $0x8] sm:$0xff]  ;;  %v34_v15 = vld [vmem:[%s290_s3 + $0x30] sm:$0xff]  ;;  %v32_v17 = vld [vmem:[%s290_s3 + $0x20] sm:$0xff] }
   0xc   :  { %87 = vmatpush.msra.mxu1 %v39_v9  ;;  %v33_v16 = vld [vmem:[%s290_s3 + $0x28] sm:$0xff]  ;;  %v31_v18 = vld [vmem:[%s290_s3 + $0x18] sm:$0xff]  ;;  %v30_v19 = vld [vmem:[%s290_s3 + $0x10] sm:$0xff] }
   0xd   :  { %132 = vmatpush.msra.mxu2 %v39_v9  ;;  %v29_v20 = vld [vmem:[%s290_s3 + $0x8] sm:$0xff]  ;;  %v28_v21 = vld [vmem:[%s290_s3] sm:$0xff]  ;;  %s175_s3 = smov [#allocation2]  }
   0xe   :  { %88 = vmatpush.msra.mxu1 %v38_v10  ;;  %v147_v22 = vld [vmem:[%s289_s2] ss:$0 sm:$0xff]  ;;  %s112_s13 = sshll.u32 %s175_s3, 4  ;;  %s113_s13 = int_to_ptr.vmem [resolvable:$true] %s112_s13 }
   0xf   :  { %133 = vmatpush.msra.mxu2 %v38_v10  ;;  %v148_v29 = vld [vmem:[%s291_s4] ss:$0 sm:$0xff] }
  0x10   :  { %89 = vmatpush.msra.mxu1 %v37_v11 }
  0x11   :  { %127 = vmatmul.msk.f32.gmra.mxu0 %vm48_vm0, %v22_v12  ;;  %134 = vmatpush.msra.mxu2 %v37_v11 }
  0x12   :  { %90 = vmatpush.msra.mxu1 %v36_v13 }
  0x13   :  { %135 = vmatpush.msra.mxu2 %v36_v13 }
  0x14   :  { %91 = vmatpush.msra.mxu1 %v35_v14 }
  0x15   :  { %136 = vmatpush.msra.mxu2 %v35_v14 }
  0x16   :  { %92 = vmatpush.msra.mxu1 %v34_v15 }
  0x17   :  { %137 = vmatpush.msra.mxu2 %v34_v15 }
  0x18   :  { %93 = vmatpush.msra.mxu1 %v33_v16 }
  0x19   :  { %138 = vmatpush.msra.mxu2 %v33_v16 }
  0x1a   :  { %94 = vmatpush.msra.mxu1 %v32_v17 }
  0x1b   :  { %139 = vmatpush.msra.mxu2 %v32_v17 }
  0x1c   :  { %95 = vmatpush.msra.mxu1 %v31_v18 }
  0x1d   :  { %140 = vmatpush.msra.mxu2 %v31_v18 }
  0x1e   :  { %96 = vmatpush.msra.mxu1 %v30_v19 }
  0x1f   :  { %141 = vmatpush.msra.mxu2 %v30_v19 }
  0x20   :  { %97 = vmatpush.msra.mxu1 %v29_v20 }
  0x21   :  { %142 = vmatpush.msra.mxu2 %v29_v20 }
  0x22   :  { %98 = vmatpush.msra.mxu1 %v28_v21 }
  0x23   :  { %143 = vmatpush.msra.mxu2 %v28_v21 }
  0x86   :  { %v72_v23 = vpop.f32.mrf.mxu0 }
  0x87   :  { %v73_v24 = vadd.f32 %v147_v22, %v72_v23 }
  0x89   :  { %v78_v25 = vmax.f32 %v73_v24, 0.0 }
  0x8b   :  { %99 = vmatmul.f32.vlgmr.msra.gmra.mxu1 %v78_v25 }
  0x8e   :  { %v75_v26 = vpop.f32.mrf.mxu0 }
  0x8f   :  { %v76_v27 = vadd.f32 %v147_v22, %v75_v26 }
  0x91   :  { %v79_v28 = vmax.f32 %v76_v27, 0.0 }
  0x93   :  { %102 = vmatmul.f32.vlgmr.msra.gmra.mxu2 %v79_v28 }
 0x108   :  { %v100_v30 = vpop.f32.mrf.mxu1 }
 0x109   :  { %v101_v31 = vadd.f32 %v148_v29, %v100_v30 }
 0x10b   :  { %106 = vst.msk [vmem:[#allocation2] sm:$0xff] %vm48_vm0, %v101_v31 }
 0x116   :  { %v103_v32 = vpop.f32.mrf.mxu2 }
 0x117   :  { %v104_v33 = vadd.f32 %v148_v29, %v103_v32 }
 0x119   :  { %107 = vst.msk [vmem:[#allocation2 + $0x8] sm:$0xff] %vm48_vm0, %v104_v33 }
 0x11a   :  { %120 = dma.vmem_to_hbm [thread:$0]  %s113_s13, 256, %s115_s15, [#allocation3], %s176_s16, %s176_s16, %s177_s17  }
 0x11b   :  { %173 = dma.done.wait [#allocation3], 256  }
 0x11c   :  { %174 = vsyncadd [#allocation3], 4294967040 }
 0x11d   :  { %125 = vsyncpa [#allocation3], 1 }

</bundles_post_ra>
